<compile_context>
chip_gen: v7x
topology: tpu7x:2x2x1
jax: 0.10.0
libtpu: 0.0.40
codegen_flags: <defaults>
</compile_context>

<pallas_src>
import functools

import jax
import jax.numpy as jnp
from jax.experimental import pallas as pl
from jax.experimental.pallas import tpu as pltpu


# --------------------------------------------------------------------------- #
# Kernel
# --------------------------------------------------------------------------- #
def self_attn_layer_kernel(tgt_ref, pos_ref, w_ref, p_ref, out_ref, *, nhead):
    """One grid step = block_b batch elements: fused QKV projection -> MHA ->
    output projection -> residual -> LayerNorm.

    w_ref : (D, 4D) packed [Wq^T*scale | Wk^T | Wv^T | Wo^T] in the MXU dtype.
    p_ref : (6, D) f32 packed [b_q*scale, b_k, b_v, b_o, ln_gamma, ln_beta].
    """
    bt, L, D = tgt_ref.shape
    hd = D // nhead
    cdt = w_ref.dtype                                   # MXU operand dtype (bf16)

    x = tgt_ref[...]                                    # (bt, L, D), input dtype
    x2 = x.reshape(bt * L, D)
    qk_in = (x + pos_ref[...]).reshape(bt * L, D).astype(cdt)   # q = k = tgt + pos
    xv = x2.astype(cdt)                                          # value = tgt

    pb = p_ref[...].astype(jnp.float32)                 # (6, D)

    # Fused Q/K projection: one (bt*L, D) x (D, 2D) MXU matmul, f32 accumulate.
    qk = jnp.dot(qk_in, w_ref[:, :2 * D], preferred_element_type=jnp.float32)
    q = (qk[:, :D] + pb[0:1]).astype(cdt)               # 1/sqrt(hd) already folded
    k = (qk[:, D:2 * D] + pb[1:2]).astype(cdt)
    v = (jnp.dot(xv, w_ref[:, 2 * D:3 * D],
                 preferred_element_type=jnp.float32) + pb[2:3]).astype(cdt)

    # Per-head attention, batched over the bt batch elements of this block.
    # nhead is small & static -> Python unroll of single-batch-dim 3-D einsums.
    ctx_heads = []
    for h in range(nhead):
        sl = slice(h * hd, (h + 1) * hd)
        qh = q[:, sl].reshape(bt, L, hd)
        kh = k[:, sl].reshape(bt, L, hd)
        vh = v[:, sl].reshape(bt, L, hd)
        s = jnp.einsum('bld,bmd->blm', qh, kh,
                       preferred_element_type=jnp.float32)       # (bt, L, L)
        s = s - jnp.max(s, axis=-1, keepdims=True)
        p = jnp.exp(s)
        inv = 1.0 / jnp.sum(p, axis=-1, keepdims=True)           # exact, (bt, L, 1)
        ctx_h = jnp.einsum('blm,bmd->bld', p.astype(cdt), vh,
                           preferred_element_type=jnp.float32)
        ctx_h = ctx_h * inv                  # normalize (L, hd) context, hd <= L
        ctx_heads.append(ctx_h.reshape(bt * L, hd).astype(cdt))
    ctx = jnp.concatenate(ctx_heads, axis=-1)                    # (bt*L, D), bf16

    # Output projection (pre-transposed weights) + residual + LayerNorm, f32.
    attn = jnp.dot(ctx, w_ref[:, 3 * D:4 * D],
                   preferred_element_type=jnp.float32) + pb[3:4]
    y = x2.astype(jnp.float32) + attn                    # dropout p=0.0 -> identity
    mean = jnp.mean(y, axis=-1, keepdims=True)
    var = jnp.mean(jnp.square(y - mean), axis=-1, keepdims=True)
    yn = (y - mean) * jax.lax.rsqrt(var + 1e-5)
    out = yn * pb[4:5] + pb[5:6]
    out_ref[...] = out.reshape(bt, L, D).astype(out_ref.dtype)


# --------------------------------------------------------------------------- #
# Chip-aware blocking
# --------------------------------------------------------------------------- #
def _chip_params():
    """(vmem_capacity_bytes, dual_tensorcore) with safe fallbacks off-TPU."""
    vmem = None
    try:
        vmem = int(pltpu.get_tpu_info().vmem_capacity_bytes)
    except Exception:
        pass
    kind = ""
    try:
        kind = jax.devices()[0].device_kind.lower()
    except Exception:
        pass
    dual_tc = any(t in kind for t in ("v7", "v5p", "v4"))
    if vmem is None:
        vmem = 64 * 1024 * 1024 if dual_tc else 128 * 1024 * 1024
    return vmem, dual_tc


def _vmem_estimate(bt, L, D, nhead, io_itemsize, mxu_itemsize):
    """Conservative per-grid-step VMEM bytes: double-buffered I/O blocks,
    resident params, f32 + compute-dtype activation slabs, live softmax tensors."""
    io = 3 * 2 * bt * L * D * io_itemsize                  # tgt / pos / out
    params = 2 * (4 * D * D * mxu_itemsize + 6 * D * 4)    # packed W + biases/LN
    acts = bt * L * D * (6 * 4 + 6 * mxu_itemsize)         # qk/q/k/v/ctx/y slabs
    scores = bt * L * L * (3 * 4 + mxu_itemsize)           # per-head s / p tensors
    return io + params + acts + scores


def _pick_block_b(B, L, D, nhead, io_itemsize, mxu_itemsize, budget, min_steps):
    """Largest power-of-two divisor of B that keeps >= min_steps grid steps and
    fits the VMEM budget (min_steps=1 on single-TC chips, 2 on dual-TC)."""
    bt = 1
    while (B % (2 * bt) == 0 and B // (2 * bt) >= min_steps
           and _vmem_estimate(2 * bt, L, D, nhead, io_itemsize,
                              mxu_itemsize) <= budget):
        bt *= 2
    return bt


# --------------------------------------------------------------------------- #
# Wrapper
# --------------------------------------------------------------------------- #
def self_attention_layer(tgt, query_pos, w_qkv, b_qkv, w_o, b_o, gamma, beta,
                         *, nhead, block_b=None, compute_dtype=jnp.bfloat16):
    """forward_post of SelfAttentionLayer (dropout=0, no masks), batch-first
    (B, L, D) layout.  MXU operands use `compute_dtype` (default bf16) with f32
    accumulation; softmax / biases / LayerNorm run in f32."""
    B, L, D = tgt.shape
    assert D % nhead == 0
    hd = D // nhead
    scale = 1.0 / float(hd) ** 0.5

    # Pack weights once wrapper-side: (D, 4D) = [Wq^T*scale | Wk^T | Wv^T | Wo^T]
    # (1/sqrt(hd) folded into Wq / b_q), stored in the MXU compute dtype.
    w_qkv32 = w_qkv.astype(jnp.float32)
    w_cat = jnp.concatenate(
        [w_qkv32[:D].T * scale, w_qkv32[D:2 * D].T, w_qkv32[2 * D:].T,
         w_o.astype(jnp.float32).T], axis=1).astype(compute_dtype)

    b3 = b_qkv.reshape(3, D).astype(jnp.float32)
    p_small = jnp.concatenate(
        [b3[0:1] * scale, b3[1:2], b3[2:3],
         b_o.reshape(1, D).astype(jnp.float32),
         gamma.reshape(1, D).astype(jnp.float32),
         beta.reshape(1, D).astype(jnp.float32)], axis=0)        # (6, D) f32

    vmem_cap, dual_tc = _chip_params()
    io_item = tgt.dtype.itemsize
    mxu_item = jnp.dtype(compute_dtype).itemsize
    if block_b is None:
        budget = vmem_cap // 4 if dual_tc else vmem_cap // 2
        min_steps = 2 if dual_tc else 1
        block_b = _pick_block_b(B, L, D, nhead, io_item, mxu_item,
                                budget, min_steps)
    assert B % block_b == 0
    grid_b = B // block_b

    est = _vmem_estimate(block_b, L, D, nhead, io_item, mxu_item)
    vmem_limit = int(min(vmem_cap // 2, max(16 * 1024 * 1024, 3 * est)))

    kernel = functools.partial(self_attn_layer_kernel, nhead=nhead)

    return pl.pallas_call(
        kernel,
        out_shape=jax.ShapeDtypeStruct((B, L, D), tgt.dtype),
        grid=(grid_b,),
        in_specs=[
            pl.BlockSpec((block_b, L, D), lambda b: (b, 0, 0)),   # tgt
            pl.BlockSpec((block_b, L, D), lambda b: (b, 0, 0)),   # query_pos
            # Constant index_map -> fetched once and kept resident across steps.
            pl.BlockSpec((D, 4 * D), lambda b: (0, 0)),           # packed weights
            pl.BlockSpec((6, D), lambda b: (0, 0)),               # biases / LN params
        ],
        out_specs=pl.BlockSpec((block_b, L, D), lambda b: (b, 0, 0)),
        compiler_params=pltpu.CompilerParams(
            dimension_semantics=("parallel",),
            vmem_limit_bytes=vmem_limit,
        ),
    )(tgt, query_pos, w_cat, p_small)


# --------------------------------------------------------------------------- #
# Reference & demo
# --------------------------------------------------------------------------- #
def reference(tgt, pos, w_qkv, b_qkv, w_o, b_o, gamma, beta, *, nhead,
              compute_dtype=jnp.bfloat16):
    """Pure-JAX forward_post (dropout=0, no masks) using the same precision
    policy as the kernel (compute_dtype MXU operands, f32 accumulation), so the
    comparison does not depend on backend-default f32 matmul precision."""
    B, L, D = tgt.shape
    hd = D // nhead
    scale = 1.0 / float(hd) ** 0.5
    cdt = compute_dtype
    f32 = jnp.float32

    wq = (w_qkv[:D].astype(f32) * scale).T.astype(cdt)
    wk = w_qkv[D:2 * D].astype(f32).T.astype(cdt)
    wv = w_qkv[2 * D:].astype(f32).T.astype(cdt)
    wo = w_o.astype(f32).T.astype(cdt)
    bq = b_qkv[0, :D].astype(f32) * scale
    bk = b_qkv[0, D:2 * D].astype(f32)
    bv = b_qkv[0, 2 * D:].astype(f32)

    qk_in = (tgt + pos).astype(cdt)
    q = (jnp.einsum('bld,de->ble', qk_in, wq, preferred_element_type=f32) + bq).astype(cdt)
    k = (jnp.einsum('bld,de->ble', qk_in, wk, preferred_element_type=f32) + bk).astype(cdt)
    v = (jnp.einsum('bld,de->ble', tgt.astype(cdt), wv,
                    preferred_element_type=f32) + bv).astype(cdt)

    q = q.reshape(B, L, nhead, hd).transpose(0, 2, 1, 3)
    k = k.reshape(B, L, nhead, hd).transpose(0, 2, 1, 3)
    v = v.reshape(B, L, nhead, hd).transpose(0, 2, 1, 3)
    s = jnp.einsum('bhld,bhmd->bhlm', q, k, preferred_element_type=f32)
    s = s - jnp.max(s, axis=-1, keepdims=True)
    p = jnp.exp(s)
    inv = 1.0 / jnp.sum(p, axis=-1, keepdims=True)
    ctx = jnp.einsum('bhlm,bhmd->bhld', p.astype(cdt), v,
                     preferred_element_type=f32) * inv
    ctx = ctx.transpose(0, 2, 1, 3).reshape(B, L, D).astype(cdt)

    attn = jnp.einsum('bld,de->ble', ctx, wo, preferred_element_type=f32) + b_o[0].astype(f32)
    y = tgt.astype(f32) + attn
    mean = jnp.mean(y, axis=-1, keepdims=True)
    var = jnp.mean(jnp.square(y - mean), axis=-1, keepdims=True)
    yn = (y - mean) * jax.lax.rsqrt(var + 1e-5)
    return (yn * gamma[0].astype(f32) + beta[0].astype(f32)).astype(tgt.dtype)


def xavier_uniform(key, shape):
    # PyTorch nn.init.xavier_uniform_: fan_out = shape[0], fan_in = shape[1]
    fan_out, fan_in = shape
    bound = (6.0 / (fan_in + fan_out)) ** 0.5
    return jax.random.uniform(key, shape, jnp.float32, -bound, bound)


if __name__ == "__main__":
    # Small shapes consistent with the module: seq L=8, batch B=2, d_model D=32, nhead=4.
    B, L, D, NHEAD = 2, 8, 32, 4

    key = jax.random.PRNGKey(0)
    k_tgt, k_pos, k_wqkv, k_wo = jax.random.split(key, 4)

    tgt = jax.random.normal(k_tgt, (B, L, D), jnp.float32)
    query_pos = jax.random.normal(k_pos, (B, L, D), jnp.float32)

    # Module init semantics: in_proj_weight (3D, D) and out_proj weight (D, D)
    # xavier-uniform, biases zero; LayerNorm weight=1, bias=0 (dim==1 params
    # untouched by _reset_parameters).
    w_qkv = xavier_uniform(k_wqkv, (3 * D, D))
    b_qkv = jnp.zeros((1, 3 * D), jnp.float32)
    w_o = xavier_uniform(k_wo, (D, D))
    b_o = jnp.zeros((1, D), jnp.float32)
    gamma = jnp.ones((1, D), jnp.float32)
    beta = jnp.zeros((1, D), jnp.float32)

    out = self_attention_layer(tgt, query_pos, w_qkv, b_qkv, w_o, b_o,
                               gamma, beta, nhead=NHEAD)
    out = jax.block_until_ready(out)

    ref = reference(tgt, query_pos, w_qkv, b_qkv, w_o, b_o, gamma, beta,
                    nhead=NHEAD)
    err = float(jnp.max(jnp.abs(out.astype(jnp.float32) - ref.astype(jnp.float32))))
    assert out.shape == (B, L, D)
    assert err < 2e-3, f"kernel does not match reference, max abs err = {err}"
    print("KERNEL_OK")
</pallas_src>

<mosaic_0001>
module attributes {stable_mosaic.version = 11 : i64} {
  func.func @self_attn_layer_kernel(%arg0: i32, %arg1: memref<2x8x32xf32, #tpu.memory_space<vmem>>, %arg2: memref<2x8x32xf32, #tpu.memory_space<vmem>>, %arg3: memref<32x128xbf16, #tpu.memory_space<vmem>>, %arg4: memref<6x32xf32, #tpu.memory_space<vmem>>, %arg5: memref<2x8x32xf32, #tpu.memory_space<vmem>>) attributes {dimension_semantics = [#tpu.dimension_semantics<parallel>], iteration_bounds = array<i64: 1>, scalar_prefetch = 0 : i64, scratch_operands = 0 : i64, tpu.core_type = #tpu.core_type<tc>, window_params = [{transform_indices = @transform_0, window_bounds = array<i64: 2, 8, 32>}, {transform_indices = @transform_1, window_bounds = array<i64: 2, 8, 32>}, {pipeline_mode = #tpu.pipeline_mode<synchronous>, transform_indices = @transform_2, window_bounds = array<i64: 32, 128>}, {pipeline_mode = #tpu.pipeline_mode<synchronous>, transform_indices = @transform_3, window_bounds = array<i64: 6, 32>}, {transform_indices = @transform_4, window_bounds = array<i64: 2, 8, 32>}]} {
    %c0 = arith.constant 0 : index
    %c0_0 = arith.constant 0 : index
    %c0_1 = arith.constant 0 : index
    %0 = vector.load %arg1[%c0, %c0_0, %c0_1] : memref<2x8x32xf32, #tpu.memory_space<vmem>>, vector<2x8x32xf32>
    %1 = vector.shape_cast %0 : vector<2x8x32xf32> to vector<16x32xf32>
    %c0_2 = arith.constant 0 : index
    %c0_3 = arith.constant 0 : index
    %c0_4 = arith.constant 0 : index
    %2 = vector.load %arg2[%c0_2, %c0_3, %c0_4] : memref<2x8x32xf32, #tpu.memory_space<vmem>>, vector<2x8x32xf32>
    %3 = arith.addf %0, %2 : vector<2x8x32xf32>
    %4 = vector.shape_cast %3 : vector<2x8x32xf32> to vector<16x32xf32>
    %5 = arith.truncf %4 : vector<16x32xf32> to vector<16x32xbf16>
    %6 = arith.truncf %1 : vector<16x32xf32> to vector<16x32xbf16>
    %c0_5 = arith.constant 0 : index
    %c0_6 = arith.constant 0 : index
    %7 = vector.load %arg4[%c0_5, %c0_6] : memref<6x32xf32, #tpu.memory_space<vmem>>, vector<6x32xf32>
    %c0_7 = arith.constant 0 : index
    %c0_8 = arith.constant 0 : index
    %8 = vector.load %arg3[%c0_7, %c0_8] : memref<32x128xbf16, #tpu.memory_space<vmem>>, vector<32x64xbf16>
    %cst = arith.constant dense<0.000000e+00> : vector<16x64xf32>
    %9 = tpu.matmul %5, %8, %cst {dimension_numbers = #tpu.dot_dimension_numbers<[1], [0], [0], [1], [0, 0, 1, 1], [], []>} : vector<16x32xbf16>, vector<32x64xbf16>, vector<16x64xf32> -> vector<16x64xf32>
    %10 = vector.extract_strided_slice %9 {offsets = [0, 0], sizes = [16, 32], strides = [1, 1]} : vector<16x64xf32> to vector<16x32xf32>
    %11 = vector.extract_strided_slice %7 {offsets = [0, 0], sizes = [1, 32], strides = [1, 1]} : vector<6x32xf32> to vector<1x32xf32>
    %12 = vector.broadcast %11 : vector<1x32xf32> to vector<16x32xf32>
    %13 = arith.addf %10, %12 : vector<16x32xf32>
    %14 = arith.truncf %13 : vector<16x32xf32> to vector<16x32xbf16>
    %15 = vector.extract_strided_slice %9 {offsets = [0, 32], sizes = [16, 32], strides = [1, 1]} : vector<16x64xf32> to vector<16x32xf32>
    %16 = vector.extract_strided_slice %7 {offsets = [1, 0], sizes = [1, 32], strides = [1, 1]} : vector<6x32xf32> to vector<1x32xf32>
    %17 = vector.broadcast %16 : vector<1x32xf32> to vector<16x32xf32>
    %18 = arith.addf %15, %17 : vector<16x32xf32>
    %19 = arith.truncf %18 : vector<16x32xf32> to vector<16x32xbf16>
    %c0_9 = arith.constant 0 : index
    %c64 = arith.constant 64 : index
    %20 = vector.load %arg3[%c0_9, %c64] : memref<32x128xbf16, #tpu.memory_space<vmem>>, vector<32x32xbf16>
    %cst_10 = arith.constant dense<0.000000e+00> : vector<16x32xf32>
    %21 = tpu.matmul %6, %20, %cst_10 {dimension_numbers = #tpu.dot_dimension_numbers<[1], [0], [0], [1], [0, 0, 1, 1], [], []>} : vector<16x32xbf16>, vector<32x32xbf16>, vector<16x32xf32> -> vector<16x32xf32>
    %22 = vector.extract_strided_slice %7 {offsets = [2, 0], sizes = [1, 32], strides = [1, 1]} : vector<6x32xf32> to vector<1x32xf32>
    %23 = vector.broadcast %22 : vector<1x32xf32> to vector<16x32xf32>
    %24 = arith.addf %21, %23 : vector<16x32xf32>
    %25 = arith.truncf %24 : vector<16x32xf32> to vector<16x32xbf16>
    %26 = vector.extract_strided_slice %14 {offsets = [0, 0], sizes = [16, 8], strides = [1, 1]} : vector<16x32xbf16> to vector<16x8xbf16>
    %27 = vector.shape_cast %26 : vector<16x8xbf16> to vector<2x8x8xbf16>
    %28 = vector.extract_strided_slice %19 {offsets = [0, 0], sizes = [16, 8], strides = [1, 1]} : vector<16x32xbf16> to vector<16x8xbf16>
    %29 = vector.shape_cast %28 : vector<16x8xbf16> to vector<2x8x8xbf16>
    %30 = vector.extract_strided_slice %25 {offsets = [0, 0], sizes = [16, 8], strides = [1, 1]} : vector<16x32xbf16> to vector<16x8xbf16>
    %31 = vector.shape_cast %30 : vector<16x8xbf16> to vector<2x8x8xbf16>
    "tpu.trace_start"() <{level = 10 : i32, message = "bld,bmd->blm"}> : () -> ()
    %cst_11 = arith.constant dense<0.000000e+00> : vector<2x8x8xf32>
    %32 = tpu.matmul %27, %29, %cst_11 {dimension_numbers = #tpu.dot_dimension_numbers<[2], [2], [1], [1], [0, 0, 0, 1, 1, 1], [0], [0]>} : vector<2x8x8xbf16>, vector<2x8x8xbf16>, vector<2x8x8xf32> -> vector<2x8x8xf32>
    "tpu.trace_stop"() : () -> ()
    %cst_12 = arith.constant dense<0xFF800000> : vector<2x8xf32>
    %33 = vector.multi_reduction <maximumf>, %32, %cst_12 [2] : vector<2x8x8xf32> to vector<2x8xf32>
    %34 = vector.shape_cast %33 : vector<2x8xf32> to vector<2x8x1xf32>
    %35 = vector.broadcast %34 : vector<2x8x1xf32> to vector<2x8x8xf32>
    %36 = arith.subf %32, %35 : vector<2x8x8xf32>
    %37 = math.exp %36 : vector<2x8x8xf32>
    %cst_13 = arith.constant dense<0.000000e+00> : vector<2x8xf32>
    %38 = vector.multi_reduction <add>, %37, %cst_13 [2] : vector<2x8x8xf32> to vector<2x8xf32>
    %39 = vector.shape_cast %38 : vector<2x8xf32> to vector<2x8x1xf32>
    %cst_14 = arith.constant 1.000000e+00 : f32
    %40 = vector.broadcast %cst_14 : f32 to vector<2x8x1xf32>
    %41 = arith.divf %40, %39 : vector<2x8x1xf32>
    %42 = arith.truncf %37 : vector<2x8x8xf32> to vector<2x8x8xbf16>
    "tpu.trace_start"() <{level = 10 : i32, message = "blm,bmd->bld"}> : () -> ()
    %cst_15 = arith.constant dense<0.000000e+00> : vector<2x8x8xf32>
    %43 = tpu.matmul %42, %31, %cst_15 {dimension_numbers = #tpu.dot_dimension_numbers<[2], [1], [1], [2], [0, 0, 0, 1, 1, 2], [0], [0]>} : vector<2x8x8xbf16>, vector<2x8x8xbf16>, vector<2x8x8xf32> -> vector<2x8x8xf32>
    "tpu.trace_stop"() : () -> ()
    %44 = vector.broadcast %41 : vector<2x8x1xf32> to vector<2x8x8xf32>
    %45 = arith.mulf %43, %44 : vector<2x8x8xf32>
    %46 = vector.shape_cast %45 : vector<2x8x8xf32> to vector<16x8xf32>
    %47 = arith.truncf %46 : vector<16x8xf32> to vector<16x8xbf16>
    %48 = vector.extract_strided_slice %14 {offsets = [0, 8], sizes = [16, 8], strides = [1, 1]} : vector<16x32xbf16> to vector<16x8xbf16>
    %49 = vector.shape_cast %48 : vector<16x8xbf16> to vector<2x8x8xbf16>
    %50 = vector.extract_strided_slice %19 {offsets = [0, 8], sizes = [16, 8], strides = [1, 1]} : vector<16x32xbf16> to vector<16x8xbf16>
    %51 = vector.shape_cast %50 : vector<16x8xbf16> to vector<2x8x8xbf16>
    %52 = vector.extract_strided_slice %25 {offsets = [0, 8], sizes = [16, 8], strides = [1, 1]} : vector<16x32xbf16> to vector<16x8xbf16>
    %53 = vector.shape_cast %52 : vector<16x8xbf16> to vector<2x8x8xbf16>
    "tpu.trace_start"() <{level = 10 : i32, message = "bld,bmd->blm"}> : () -> ()
    %cst_16 = arith.constant dense<0.000000e+00> : vector<2x8x8xf32>
    %54 = tpu.matmul %49, %51, %cst_16 {dimension_numbers = #tpu.dot_dimension_numbers<[2], [2], [1], [1], [0, 0, 0, 1, 1, 1], [0], [0]>} : vector<2x8x8xbf16>, vector<2x8x8xbf16>, vector<2x8x8xf32> -> vector<2x8x8xf32>
    "tpu.trace_stop"() : () -> ()
    %cst_17 = arith.constant dense<0xFF800000> : vector<2x8xf32>
    %55 = vector.multi_reduction <maximumf>, %54, %cst_17 [2] : vector<2x8x8xf32> to vector<2x8xf32>
    %56 = vector.shape_cast %55 : vector<2x8xf32> to vector<2x8x1xf32>
    %57 = vector.broadcast %56 : vector<2x8x1xf32> to vector<2x8x8xf32>
    %58 = arith.subf %54, %57 : vector<2x8x8xf32>
    %59 = math.exp %58 : vector<2x8x8xf32>
    %cst_18 = arith.constant dense<0.000000e+00> : vector<2x8xf32>
    %60 = vector.multi_reduction <add>, %59, %cst_18 [2] : vector<2x8x8xf32> to vector<2x8xf32>
    %61 = vector.shape_cast %60 : vector<2x8xf32> to vector<2x8x1xf32>
    %cst_19 = arith.constant 1.000000e+00 : f32
    %62 = vector.broadcast %cst_19 : f32 to vector<2x8x1xf32>
    %63 = arith.divf %62, %61 : vector<2x8x1xf32>
    %64 = arith.truncf %59 : vector<2x8x8xf32> to vector<2x8x8xbf16>
    "tpu.trace_start"() <{level = 10 : i32, message = "blm,bmd->bld"}> : () -> ()
    %cst_20 = arith.constant dense<0.000000e+00> : vector<2x8x8xf32>
    %65 = tpu.matmul %64, %53, %cst_20 {dimension_numbers = #tpu.dot_dimension_numbers<[2], [1], [1], [2], [0, 0, 0, 1, 1, 2], [0], [0]>} : vector<2x8x8xbf16>, vector<2x8x8xbf16>, vector<2x8x8xf32> -> vector<2x8x8xf32>
    "tpu.trace_stop"() : () -> ()
    %66 = vector.broadcast %63 : vector<2x8x1xf32> to vector<2x8x8xf32>
    %67 = arith.mulf %65, %66 : vector<2x8x8xf32>
    %68 = vector.shape_cast %67 : vector<2x8x8xf32> to vector<16x8xf32>
    %69 = arith.truncf %68 : vector<16x8xf32> to vector<16x8xbf16>
    %70 = vector.extract_strided_slice %14 {offsets = [0, 16], sizes = [16, 8], strides = [1, 1]} : vector<16x32xbf16> to vector<16x8xbf16>
    %71 = vector.shape_cast %70 : vector<16x8xbf16> to vector<2x8x8xbf16>
    %72 = vector.extract_strided_slice %19 {offsets = [0, 16], sizes = [16, 8], strides = [1, 1]} : vector<16x32xbf16> to vector<16x8xbf16>
    %73 = vector.shape_cast %72 : vector<16x8xbf16> to vector<2x8x8xbf16>
    %74 = vector.extract_strided_slice %25 {offsets = [0, 16], sizes = [16, 8], strides = [1, 1]} : vector<16x32xbf16> to vector<16x8xbf16>
    %75 = vector.shape_cast %74 : vector<16x8xbf16> to vector<2x8x8xbf16>
    "tpu.trace_start"() <{level = 10 : i32, message = "bld,bmd->blm"}> : () -> ()
    %cst_21 = arith.constant dense<0.000000e+00> : vector<2x8x8xf32>
    %76 = tpu.matmul %71, %73, %cst_21 {dimension_numbers = #tpu.dot_dimension_numbers<[2], [2], [1], [1], [0, 0, 0, 1, 1, 1], [0], [0]>} : vector<2x8x8xbf16>, vector<2x8x8xbf16>, vector<2x8x8xf32> -> vector<2x8x8xf32>
    "tpu.trace_stop"() : () -> ()
    %cst_22 = arith.constant dense<0xFF800000> : vector<2x8xf32>
    %77 = vector.multi_reduction <maximumf>, %76, %cst_22 [2] : vector<2x8x8xf32> to vector<2x8xf32>
    %78 = vector.shape_cast %77 : vector<2x8xf32> to vector<2x8x1xf32>
    %79 = vector.broadcast %78 : vector<2x8x1xf32> to vector<2x8x8xf32>
    %80 = arith.subf %76, %79 : vector<2x8x8xf32>
    %81 = math.exp %80 : vector<2x8x8xf32>
    %cst_23 = arith.constant dense<0.000000e+00> : vector<2x8xf32>
    %82 = vector.multi_reduction <add>, %81, %cst_23 [2] : vector<2x8x8xf32> to vector<2x8xf32>
    %83 = vector.shape_cast %82 : vector<2x8xf32> to vector<2x8x1xf32>
    %cst_24 = arith.constant 1.000000e+00 : f32
    %84 = vector.broadcast %cst_24 : f32 to vector<2x8x1xf32>
    %85 = arith.divf %84, %83 : vector<2x8x1xf32>
    %86 = arith.truncf %81 : vector<2x8x8xf32> to vector<2x8x8xbf16>
    "tpu.trace_start"() <{level = 10 : i32, message = "blm,bmd->bld"}> : () -> ()
    %cst_25 = arith.constant dense<0.000000e+00> : vector<2x8x8xf32>
    %87 = tpu.matmul %86, %75, %cst_25 {dimension_numbers = #tpu.dot_dimension_numbers<[2], [1], [1], [2], [0, 0, 0, 1, 1, 2], [0], [0]>} : vector<2x8x8xbf16>, vector<2x8x8xbf16>, vector<2x8x8xf32> -> vector<2x8x8xf32>
    "tpu.trace_stop"() : () -> ()
    %88 = vector.broadcast %85 : vector<2x8x1xf32> to vector<2x8x8xf32>
    %89 = arith.mulf %87, %88 : vector<2x8x8xf32>
    %90 = vector.shape_cast %89 : vector<2x8x8xf32> to vector<16x8xf32>
    %91 = arith.truncf %90 : vector<16x8xf32> to vector<16x8xbf16>
    %92 = vector.extract_strided_slice %14 {offsets = [0, 24], sizes = [16, 8], strides = [1, 1]} : vector<16x32xbf16> to vector<16x8xbf16>
    %93 = vector.shape_cast %92 : vector<16x8xbf16> to vector<2x8x8xbf16>
    %94 = vector.extract_strided_slice %19 {offsets = [0, 24], sizes = [16, 8], strides = [1, 1]} : vector<16x32xbf16> to vector<16x8xbf16>
    %95 = vector.shape_cast %94 : vector<16x8xbf16> to vector<2x8x8xbf16>
    %96 = vector.extract_strided_slice %25 {offsets = [0, 24], sizes = [16, 8], strides = [1, 1]} : vector<16x32xbf16> to vector<16x8xbf16>
    %97 = vector.shape_cast %96 : vector<16x8xbf16> to vector<2x8x8xbf16>
    "tpu.trace_start"() <{level = 10 : i32, message = "bld,bmd->blm"}> : () -> ()
    %cst_26 = arith.constant dense<0.000000e+00> : vector<2x8x8xf32>
    %98 = tpu.matmul %93, %95, %cst_26 {dimension_numbers = #tpu.dot_dimension_numbers<[2], [2], [1], [1], [0, 0, 0, 1, 1, 1], [0], [0]>} : vector<2x8x8xbf16>, vector<2x8x8xbf16>, vector<2x8x8xf32> -> vector<2x8x8xf32>
    "tpu.trace_stop"() : () -> ()
    %cst_27 = arith.constant dense<0xFF800000> : vector<2x8xf32>
    %99 = vector.multi_reduction <maximumf>, %98, %cst_27 [2] : vector<2x8x8xf32> to vector<2x8xf32>
    %100 = vector.shape_cast %99 : vector<2x8xf32> to vector<2x8x1xf32>
    %101 = vector.broadcast %100 : vector<2x8x1xf32> to vector<2x8x8xf32>
    %102 = arith.subf %98, %101 : vector<2x8x8xf32>
    %103 = math.exp %102 : vector<2x8x8xf32>
    %cst_28 = arith.constant dense<0.000000e+00> : vector<2x8xf32>
    %104 = vector.multi_reduction <add>, %103, %cst_28 [2] : vector<2x8x8xf32> to vector<2x8xf32>
    %105 = vector.shape_cast %104 : vector<2x8xf32> to vector<2x8x1xf32>
    %cst_29 = arith.constant 1.000000e+00 : f32
    %106 = vector.broadcast %cst_29 : f32 to vector<2x8x1xf32>
    %107 = arith.divf %106, %105 : vector<2x8x1xf32>
    %108 = arith.truncf %103 : vector<2x8x8xf32> to vector<2x8x8xbf16>
    "tpu.trace_start"() <{level = 10 : i32, message = "blm,bmd->bld"}> : () -> ()
    %cst_30 = arith.constant dense<0.000000e+00> : vector<2x8x8xf32>
    %109 = tpu.matmul %108, %97, %cst_30 {dimension_numbers = #tpu.dot_dimension_numbers<[2], [1], [1], [2], [0, 0, 0, 1, 1, 2], [0], [0]>} : vector<2x8x8xbf16>, vector<2x8x8xbf16>, vector<2x8x8xf32> -> vector<2x8x8xf32>
    "tpu.trace_stop"() : () -> ()
    %110 = vector.broadcast %107 : vector<2x8x1xf32> to vector<2x8x8xf32>
    %111 = arith.mulf %109, %110 : vector<2x8x8xf32>
    %112 = vector.shape_cast %111 : vector<2x8x8xf32> to vector<16x8xf32>
    %113 = arith.truncf %112 : vector<16x8xf32> to vector<16x8xbf16>
    %114 = tpu.concatenate %47, %69, %91, %113 in 1 : vector<16x8xbf16>, vector<16x8xbf16>, vector<16x8xbf16>, vector<16x8xbf16> -> vector<16x32xbf16>
    %c0_31 = arith.constant 0 : index
    %c96 = arith.constant 96 : index
    %115 = vector.load %arg3[%c0_31, %c96] : memref<32x128xbf16, #tpu.memory_space<vmem>>, vector<32x32xbf16>
    %cst_32 = arith.constant dense<0.000000e+00> : vector<16x32xf32>
    %116 = tpu.matmul %114, %115, %cst_32 {dimension_numbers = #tpu.dot_dimension_numbers<[1], [0], [0], [1], [0, 0, 1, 1], [], []>} : vector<16x32xbf16>, vector<32x32xbf16>, vector<16x32xf32> -> vector<16x32xf32>
    %117 = vector.extract_strided_slice %7 {offsets = [3, 0], sizes = [1, 32], strides = [1, 1]} : vector<6x32xf32> to vector<1x32xf32>
    %118 = vector.broadcast %117 : vector<1x32xf32> to vector<16x32xf32>
    %119 = arith.addf %116, %118 : vector<16x32xf32>
    %120 = arith.addf %1, %119 : vector<16x32xf32>
    %cst_33 = arith.constant dense<0.000000e+00> : vector<16xf32>
    %121 = vector.multi_reduction <add>, %120, %cst_33 [1] : vector<16x32xf32> to vector<16xf32>
    %122 = vector.shape_cast %121 : vector<16xf32> to vector<16x1xf32>
    %cst_34 = arith.constant 3.200000e+01 : f32
    %123 = vector.broadcast %cst_34 : f32 to vector<16x1xf32>
    %124 = arith.divf %122, %123 : vector<16x1xf32>
    %125 = vector.broadcast %124 : vector<16x1xf32> to vector<16x32xf32>
    %126 = arith.subf %120, %125 : vector<16x32xf32>
    %127 = arith.mulf %126, %126 : vector<16x32xf32>
    %cst_35 = arith.constant dense<0.000000e+00> : vector<16xf32>
    %128 = vector.multi_reduction <add>, %127, %cst_35 [1] : vector<16x32xf32> to vector<16xf32>
    %129 = vector.shape_cast %128 : vector<16xf32> to vector<16x1xf32>
    %cst_36 = arith.constant 3.200000e+01 : f32
    %130 = vector.broadcast %cst_36 : f32 to vector<16x1xf32>
    %131 = arith.divf %129, %130 : vector<16x1xf32>
    %132 = vector.broadcast %124 : vector<16x1xf32> to vector<16x32xf32>
    %133 = arith.subf %120, %132 : vector<16x32xf32>
    %cst_37 = arith.constant 9.99999974E-6 : f32
    %134 = vector.broadcast %cst_37 : f32 to vector<16x1xf32>
    %135 = arith.addf %131, %134 : vector<16x1xf32>
    %136 = math.rsqrt %135 : vector<16x1xf32>
    %137 = vector.broadcast %136 : vector<16x1xf32> to vector<16x32xf32>
    %138 = arith.mulf %133, %137 : vector<16x32xf32>
    %139 = vector.extract_strided_slice %7 {offsets = [4, 0], sizes = [1, 32], strides = [1, 1]} : vector<6x32xf32> to vector<1x32xf32>
    %140 = vector.broadcast %139 : vector<1x32xf32> to vector<16x32xf32>
    %141 = arith.mulf %138, %140 : vector<16x32xf32>
    %142 = vector.extract_strided_slice %7 {offsets = [5, 0], sizes = [1, 32], strides = [1, 1]} : vector<6x32xf32> to vector<1x32xf32>
    %143 = vector.broadcast %142 : vector<1x32xf32> to vector<16x32xf32>
    %144 = arith.addf %141, %143 : vector<16x32xf32>
    %145 = vector.shape_cast %144 : vector<16x32xf32> to vector<2x8x32xf32>
    %c0_38 = arith.constant 0 : index
    %c0_39 = arith.constant 0 : index
    %c0_40 = arith.constant 0 : index
    %146 = vector.load %arg5[%c0_38, %c0_39, %c0_40] : memref<2x8x32xf32, #tpu.memory_space<vmem>>, vector<2x8x32xf32>
    tpu.vector_store %arg5[%c0_38, %c0_39, %c0_40], %145 {strides = array<i32>} : memref<2x8x32xf32, #tpu.memory_space<vmem>>, vector<2x8x32xf32>,
    return
  }
  func.func @transform_0(%arg0: i32) -> (i32, i32, i32) {
    %c0_i32 = arith.constant 0 : i32
    %c0_i32_0 = arith.constant 0 : i32
    %c0_i32_1 = arith.constant 0 : i32
    return %arg0, %c0_i32, %c0_i32_0 : i32, i32, i32
  }
  func.func @transform_1(%arg0: i32) -> (i32, i32, i32) {
    %c0_i32 = arith.constant 0 : i32
    %c0_i32_0 = arith.constant 0 : i32
    %c0_i32_1 = arith.constant 0 : i32
    return %arg0, %c0_i32, %c0_i32_0 : i32, i32, i32
  }
  func.func @transform_2(%arg0: i32) -> (i32, i32) {
    %c0_i32 = arith.constant 0 : i32
    %c0_i32_0 = arith.constant 0 : i32
    %c0_i32_1 = arith.constant 0 : i32
    return %c0_i32, %c0_i32_0 : i32, i32
  }
  func.func @transform_3(%arg0: i32) -> (i32, i32) {
    %c0_i32 = arith.constant 0 : i32
    %c0_i32_0 = arith.constant 0 : i32
    %c0_i32_1 = arith.constant 0 : i32
    return %c0_i32, %c0_i32_0 : i32, i32
  }
  func.func @transform_4(%arg0: i32) -> (i32, i32, i32) {
    %c0_i32 = arith.constant 0 : i32
    %c0_i32_0 = arith.constant 0 : i32
    %c0_i32_1 = arith.constant 0 : i32
    return %arg0, %c0_i32, %c0_i32_0 : i32, i32, i32
  }
}

</mosaic_0001>

<bundles_post_ra>
// kernel: tpu_custom_call.1
= control target key start
LH: loop header
LB: loop body
LE: loop exit
PB: predicated region body
PF: predicated region fallthrough
CT: control target
= control target key end

     0   :  { %9 = vsyncpa [#allocation3], 0  ;;  %s1942_s0 = inlined_call_operand.hbm [shape: f32[2,8,32], index: 0, kind: input, shape index: {}]   ;;  %s1943_s1 = inlined_call_operand.hbm [shape: f32[2,8,32], index: 1, kind: input, shape index: {}]   ;;  %s1944_s2 = inlined_call_operand.hbm [shape: bf16[32,128], index: 2, kind: input, shape index: {}]   ;;  %s1945_s3 = inlined_call_operand.vmem [shape: f32[6,32], index: 3, kind: input, shape index: {}]   ;;  %s1946_s4 = inlined_call_operand.hbm [shape: f32[2,8,32], index: 4, kind: output, shape index: {}]  }
   0x1   :  { %10 = vsyncpa [#allocation6], 0 }
   0x2   :  { %11 = vsyncpa [#allocation4], 0  ;;  %s1600_s15 = smov [#allocation5]   ;;  %s1601_s17 = smov [#allocation2]  }
   0x3   :  { %s29_s16 = sshll.u32 %s1600_s15, 4  ;;  %s17_s18 = sshll.u32 %s1601_s17, 4  ;;  %s30_s16 = int_to_ptr.vmem [resolvable:$true] %s29_s16  ;;  %s1645_s18 = int_to_ptr.vmem [resolvable:$true] %s17_s18 }
   0x4   :  { %s1506_s21 = scalar_lea.hbm %s1943_s1, 256 }
   0x5   :  { %p1507_p0 = scmp.ne.s32.totalorder %s1943_s1, %s1506_s21  ;;  %p1510_p1 = scmp.lt.u32.totalorder %s1506_s21, %s1943_s1 }
   0x7   :  { %p1512_p2 = pnand %p1510_p1, %p1507_p0 }
   0x9   :  { %1515 = shalt.err (!%p1512_p2)
}
   0xa   :  { %s1516_s26 = scalar_lea.vmem %s30_s16, 256  ;;  %p1521_p4 = scmp.lt.s32.totalorder %s30_s16, %s30_s16 }
   0xb   :  { %p1517_p3 = scmp.ne.s32.totalorder %s30_s16, %s1516_s26  ;;  %p1522_p5 = scmp.lt.s32.totalorder %s1516_s26, %s1516_s26 }
   0xd   :  { %p1523_p6 = por %p1522_p5, %p1521_p4 }
   0xf   :  { %p1524_p7 = pnand %p1523_p6, %p1517_p3 }
  0x11   :  { %1527 = shalt.err (!%p1524_p7)
}
  0x12   :  { %s1602_s27 = smov 128   ;;  %s1603_s28 = smov 8  }
  0x13   :  { %35 = dma.hbm_to_vmem [thread:$0]  %s1943_s1, 256, %s30_s16, [#allocation6], %s1602_s27, %s1602_s27, %s1603_s28  }
  0x14   :  { %s1528_s7 = scalar_lea.hbm %s1942_s0, 256 }
  0x15   :  { %p1529_p8 = scmp.ne.s32.totalorder %s1942_s0, %s1528_s7  ;;  %p1532_p9 = scmp.lt.u32.totalorder %s1528_s7, %s1942_s0 }
  0x17   :  { %p1534_p10 = pnand %p1532_p9, %p1529_p8 }
  0x19   :  { %1537 = shalt.err (!%p1534_p10)
}
  0x1a   :  { %s1538_s12 = scalar_lea.vmem %s1645_s18, 256  ;;  %p1543_p12 = scmp.lt.s32.totalorder %s1645_s18, %s1645_s18 }
  0x1b   :  { %p1539_p11 = scmp.ne.s32.totalorder %s1645_s18, %s1538_s12  ;;  %p1544_p13 = scmp.lt.s32.totalorder %s1538_s12, %s1538_s12 }
  0x1d   :  { %p1545_p0 = por %p1544_p13, %p1543_p12 }
  0x1f   :  { %p1546_p1 = pnand %p1545_p0, %p1539_p11 }
  0x21   :  { %1549 = shalt.err (!%p1546_p1)
}
  0x22   :  { %23 = dma.hbm_to_vmem [thread:$0]  %s1942_s0, 256, %s1645_s18, [#allocation3], %s1602_s27, %s1602_s27, %s1603_s28  }
  0x23   :  { %s1604_s14 = smov [#allocation7]   ;;  %s1550_s19 = scalar_lea.hbm %s1944_s2, 256 }
  0x24   :  { %s41_s15 = sshll.u32 %s1604_s14, 4  ;;  %p1551_p2 = scmp.ne.s32.totalorder %s1944_s2, %s1550_s19  ;;  %s42_s15 = int_to_ptr.vmem [resolvable:$true] %s41_s15 }
  0x25   :  { %p1554_p3 = scmp.lt.u32.totalorder %s1550_s19, %s1944_s2 }
  0x27   :  { %p1556_p4 = pnand %p1554_p3, %p1551_p2 }
  0x29   :  { %1559 = shalt.err (!%p1556_p4)
}
  0x2a   :  { %s1560_s24 = scalar_lea.vmem %s42_s15, 256  ;;  %p1565_p6 = scmp.lt.s32.totalorder %s42_s15, %s42_s15 }
  0x2b   :  { %p1561_p5 = scmp.ne.s32.totalorder %s42_s15, %s1560_s24  ;;  %p1566_p7 = scmp.lt.s32.totalorder %s1560_s24, %s1560_s24 }
  0x2d   :  { %p1567_p8 = por %p1566_p7, %p1565_p6 }
  0x2f   :  { %p1568_p9 = pnand %p1567_p8, %p1561_p5 }
  0x31   :  { %1571 = shalt.err (!%p1568_p9)
}
  0x32   :  { %s1605_s0 = smov 64   ;;  %s1606_s18 = smov 4  }
  0x33   :  { %47 = dma.hbm_to_vmem [thread:$0]  %s1944_s2, 256, %s42_s15, [#allocation6], %s1605_s0, %s1605_s0, %s1606_s18  }
  0x34   :  { %1594 = dma.done.wait [#allocation3], 256  }
  0x35   :  { %1595 = vsyncadd [#allocation3], 4294967040 }
  0x36   :  { %1596 = dma.done.wait [#allocation6], 512  }
  0x37   :  { %1597 = vsyncadd [#allocation6], 4294966784  ;;  %v130_v0 = vlaneseq  ;;  %v1607_v1 = vmov 0.0   ;;  %vm1608_vm0 = vmmov 0   ;;  %v1466_v3 = vld [vmem:[#allocation7] sm:$0xff]   ;;  %v1467_v5 = vld [vmem:[#allocation7 + $0x8] sm:$0xff]  }
  0x38   :  { %1326 = vmatprep.subr.bf16.mxu0 %v1607_v1  ;;  %1330 = vmatprep.mubr.msk.bf16.mxu0 %vm1608_vm0, %v1607_v1  ;;  %v1705_v6 = vld [vmem:[#allocation2] sm:$0xff]  ;;  %v1707_v7 = vld [vmem:[#allocation2 + $0x8] sm:$0xff]  ;;  %v62_v8 = vld [vmem:[#allocation5] sm:$0xff]  ;;  %vm85_vm1 = vcmask 261120   ;;  %s1609_s30 = smov 32   ;;  %vm219_vm2 = vcmask 64512  }
  0x39   :  { %1334 = vmatprep.subr.bf16.mxu1 %v1607_v1  ;;  %1338 = vmatprep.mubr.msk.bf16.mxu1 %vm1608_vm0, %v1607_v1  ;;  %v1702_v2 = vshrl.u32 %v130_v0, 7  ;;  %v63_v9 = vld [vmem:[#allocation5 + $0x8] sm:$0xff]  ;;  %v64_v10 = vadd.f32 %v62_v8, %v1705_v6  ;;  %v1714_v11 = vld [vmem:[%s1945_s3] sm:$0x3f]  ;;  %v67_v18 = vpack.c.bf16 %v1707_v7, %v1705_v6  ;;  %s1610_s3 = smov 96   ;;  %vm342_vm3 = vcmask 1043456  }
  0x3a   :  { %1327 = vmatpush3.bf16.msra.mxu0 %v1466_v3  ;;  %154 = vrot.lane.b32.xlu1 %v1467_v5, %s1605_s0  ;;  %v65_v12 = vadd.f32 %v63_v9, %v1707_v7  ;;  %s1611_s5 = smov 88   ;;  %s1612_s6 = smov 120   ;;  %vm1116_vm4 = vcmask 130048   ;;  %vm1119_vm5 = vcmask 195584  }
  0x3b   :  { %v139_v4 = vsub.s32 1, %v1702_v2  ;;  %1328 = vmatprep.subr.bf16.mxu0 %v1607_v1  ;;  %v132_v27 = vsub.s32 0, %v1702_v2  ;;  %v150_v37 = vsub.s32 2, %v1702_v2  ;;  %s1613_s7 = smov 80   ;;  %s1614_s8 = smov 112  }
  0x3c   :  { %v66_v14 = vpack.c.bf16 %v65_v12, %v64_v10  ;;  %s1615_s9 = smov 72   ;;  %s1616_s10 = smov 104  }
  0x3d   :  { %v140_v13 = vrot.slane %v1714_v11, %v139_v4  ;;  %v133_v28 = vrot.slane %v1714_v11, %v132_v27  ;;  %v151_v38 = vrot.slane %v1714_v11, %v150_v37  ;;  %s1617_s11 = smov 16   ;;  %s1618_s12 = smov 24  }
  0x3e   :  { %1329 = vmatpush3.bf16.msra.mxu0 %v1467_v5  ;;  %s1619_s1 = smov [#allocation8]  }
  0x3f   :  { %142 = vrot.lane.b32.xlu0 %v140_v13, %s1609_s30  ;;  %1342 = vmatprep.subr.bf16.mxu0 %v1607_v1  ;;  %s1237_s13 = sshll.u32 %s1619_s1, 4  ;;  %s1238_s13 = int_to_ptr.vmem [resolvable:$true] %s1237_s13 }
  0x40   :  { %s1572_s14 = scalar_lea.vmem %s1238_s13, 256  ;;  %p1577_p11 = scmp.lt.s32.totalorder %s1238_s13, %s1238_s13 }
  0x41   :  { %1331 = vmatmul.mubr.msk.bf16.vlgmr.msra.gmra.mrb[0].mxu0 %vm85_vm1, %v66_v14  ;;  %p1573_p10 = scmp.ne.s32.totalorder %s1238_s13, %s1572_s14  ;;  %p1578_p12 = scmp.lt.s32.totalorder %s1572_s14, %s1572_s14 }
  0x42   :  { %1344 = vmatprep.mubr.msk.bf16.mxu0 %vm1608_vm0, %v1607_v1 }
  0x43   :  { %152 = vrot.lane.b32.xlu0 %v1466_v3, %s1605_s0  ;;  %p1579_p13 = por %p1578_p12, %p1577_p11 }
  0x45   :  { %p1580_p0 = pnand %p1579_p13, %p1573_p10 }
  0xac   :  { %v155_v17 = vpop.permute.xlu1 %154 }
  0xb1   :  { %v143_v15 = vpop.permute.xlu0 %142 }
  0xb5   :  { %v153_v16 = vpop.permute.xlu0 %152 }
  0xb6   :  { %1335 = vmatpush3.bf16.msra.mxu1 %v153_v16 }
  0xb7   :  { %1336 = vmatprep.subr.bf16.mxu1 %v1607_v1 }
  0xba   :  { %1337 = vmatpush3.bf16.msra.mxu1 %v155_v17 }
  0xbb   :  { %1348 = vmatprep.subr.bf16.mxu1 %v1607_v1 }
  0xbd   :  { %1339 = vmatmul.mubr.msk.bf16.vlgmr.msra.gmra.mrb[0].mxu1 %vm85_vm1, %v67_v18 }
  0xbe   :  { %1350 = vmatprep.mubr.msk.bf16.mxu1 %vm1608_vm0, %v1607_v1 }
 0x114   :  { %v123_v19 = vpop.f32.mrb[0].mxu0 }
 0x115   :  { %v145_v20 = vadd.f32 %v143_v15, %v123_v19  ;;  %v1332_v21 = vpop.f32.mrb[1].mxu0  ;;  %v134_v32 = vadd.f32 %v133_v28, %v123_v19 }
 0x116   :  { %v126_v22 = vpop.f32.mrb[2].mxu0 }
 0x117   :  { %v1732_v23 = vpack.c.bf16 %v145_v20, %v145_v20  ;;  %v146_v24 = vadd.f32 %v143_v15, %v126_v22  ;;  %v1333_v25 = vpop.f32.mrb[3].mxu0  ;;  %v135_v34 = vadd.f32 %v133_v28, %v126_v22  ;;  %v1744_v35 = vpack.c.bf16 %v134_v32, %v134_v32 }
 0x119   :  { %v1734_v26 = vpack.c.bf16 %v146_v24, %v146_v24  ;;  %217 = vrot.lane.b32.xlu1 %v1732_v23, %s1610_s3  ;;  %v1746_v36 = vpack.c.bf16 %v135_v34, %v135_v34 }
 0x11b   :  { %267 = vrot.lane.b32.xlu0 %v1734_v26, %s1610_s3 }
 0x18b   :  { %v218_v29 = vpop.permute.xlu1 %217 }
 0x18c   :  { %v224_v30 = vsel %vm219_vm2, %v218_v29, 0 }
 0x18d   :  { %1343 = vmatpush3.bf16.xpose.msra.mxu0 %v224_v30  ;;  %v268_v31 = vpop.permute.xlu0 %267 }
 0x18e   :  { %v273_v33 = vsel %vm219_vm2, %v268_v31, 0  ;;  %1354 = vmatprep.subr.bf16.mxu0 %v1607_v1 }
 0x18f   :  { %1349 = vmatpush3.bf16.xpose.msra.mxu1 %v273_v33 }
 0x190   :  { %1360 = vmatprep.subr.bf16.mxu1 %v1607_v1  ;;  %v195_v39 = vpop.f32.mrb[0].mxu1 }
 0x191   :  { %v196_v40 = vadd.f32 %v195_v39, %v151_v38  ;;  %v1340_v41 = vpop.f32.mrb[1].mxu1 }
 0x192   :  { %v198_v42 = vpop.f32.mrb[2].mxu1 }
 0x193   :  { %v199_v43 = vadd.f32 %v198_v42, %v151_v38  ;;  %v1341_v44 = vpop.f32.mrb[3].mxu1  ;;  %v1758_v45 = vpack.c.bf16 %v196_v40, %v196_v40 }
 0x194   :  { %1345 = vmatmul.mubr.msk.bf16.vlgmr.msra.gmra.mrb[4].mxu0 %vm219_vm2, %v1744_v35 }
 0x195   :  { %1356 = vmatprep.mubr.msk.bf16.mxu0 %vm1608_vm0, %v1607_v1  ;;  %v1760_v46 = vpack.c.bf16 %v199_v43, %v199_v43  ;;  %v344_v47 = vsel %vm342_vm3, %v1758_v45, 0 }
 0x196   :  { %1351 = vmatmul.mubr.msk.bf16.vlgmr.msra.gmra.mrb[4].mxu1 %vm219_vm2, %v1746_v36  ;;  %1355 = vmatpush3.bf16.msra.mxu0 %v344_v47 }
 0x197   :  { %1362 = vmatprep.mubr.msk.bf16.mxu1 %vm1608_vm0, %v1607_v1  ;;  %v390_v48 = vsel %vm342_vm3, %v1760_v46, 0  ;;  %1366 = vmatprep.subr.bf16.mxu0 %v1607_v1 }
 0x198   :  { %1361 = vmatpush3.bf16.msra.mxu1 %v390_v48 }
 0x199   :  { %1372 = vmatprep.subr.bf16.mxu1 %v1607_v1 }
 0x267   :  { %v260_v49 = vpop.f32.mrb[4].mxu0 }
 0x268   :  { %v1346_v50 = vpop.f32.mrb[5].mxu0  ;;  %v315_v51 = vsel %vm219_vm2, %v260_v49, -inf }
 0x269   :  { %v309_v52 = vpop.f32.mrb[4].mxu1  ;;  %316 = vmax.xlane.f32.xlu1 %v315_v51  ;;  %v263_v53 = vpop.f32.mrb[6].mxu0 }
 0x26a   :  { %v1347_v54 = vpop.f32.mrb[7].mxu0  ;;  %v1352_v55 = vpop.f32.mrb[5].mxu1  ;;  %v318_v56 = vsel %vm219_vm2, %v309_v52, -inf }
 0x26b   :  { %319 = vmax.xlane.f32.xlu0 %v318_v56  ;;  %v312_v57 = vpop.f32.mrb[6].mxu1 }
 0x26c   :  { %v1353_v58 = vpop.f32.mrb[7].mxu1 }
 0x27a   :  { %487 = vrot.lane.b32.xlu1 %v1734_v26, %s1611_s5 }
 0x27e   :  { %435 = vrot.lane.b32.xlu1 %v1744_v35, %s1612_s6 }
 0x281   :  { %437 = vrot.lane.b32.xlu0 %v1732_v23, %s1611_s5 }
 0x282   :  { %607 = vrot.lane.b32.xlu1 %v1760_v46, %s1612_s6 }
 0x285   :  { %485 = vrot.lane.b32.xlu0 %v1746_v36, %s1612_s6 }
 0x289   :  { %559 = vrot.lane.b32.xlu0 %v1758_v45, %s1612_s6 }
 0x2f6   :  { %v317_v59 = vpop.xlane.xlu1 %316 }
 0x2f7   :  { %v321_v60 = vsub.f32 %v260_v49, %v317_v59 }
 0x2f8   :  { %v320_v61 = vpop.xlane.xlu0 %319 }
 0x2f9   :  { %v323_v62 = vmul.f32 1.442695, %v321_v60  ;;  %v322_v63 = vsub.f32 %v309_v52, %v320_v61 }
 0x2fa   :  { %v488_v4 = vpop.permute.xlu1 %487 }
 0x2fb   :  { %1470 = vpow2.f32 %v323_v62  ;;  %v325_v0 = vmul.f32 1.442695, %v322_v63  ;;  %v493_v15 = vsel %vm219_vm2, %v488_v4, 0 }
 0x2fc   :  { %v438_v3 = vpop.permute.xlu0 %437 }
 0x2fd   :  { %1472 = vpow2.f32 %v325_v0  ;;  %v443_v12 = vsel %vm219_vm2, %v438_v3, 0 }
 0x2fe   :  { %v436_v14 = vpop.permute.xlu1 %435 }
 0x300   :  { %v486_v10 = vpop.permute.xlu0 %485 }
 0x302   :  { %v608_v17 = vpop.permute.xlu1 %607 }
 0x303   :  { %v613_v19 = vsel %vm342_vm3, %v608_v17, 0 }
 0x304   :  { %v560_v16 = vpop.permute.xlu0 %559 }
 0x305   :  { %v1776_v5 = vpop.eup %1470  ;;  %v565_v18 = vsel %vm342_vm3, %v560_v16, 0 }
 0x306   :  { %v337_v8 = vpack.c.bf16 %v1776_v5, %v1776_v5 }
 0x307   :  { %v1780_v9 = vpop.eup %1472 }
 0x308   :  { %1357 = vmatmul.mubr.msk.bf16.vlgmr.msra.gmra.mrb[8].mxu0 %vm219_vm2, %v337_v8  ;;  %v338_v13 = vpack.c.bf16 %v1780_v9, %v1780_v9 }
 0x309   :  { %1367 = vmatpush3.bf16.xpose.msra.mxu0 %v443_v12  ;;  %1368 = vmatprep.mubr.msk.bf16.mxu0 %vm1608_vm0, %v1607_v1 }
 0x30a   :  { %1363 = vmatmul.mubr.msk.bf16.vlgmr.msra.gmra.mrb[8].mxu1 %vm219_vm2, %v338_v13  ;;  %1378 = vmatprep.subr.bf16.mxu0 %v1607_v1 }
 0x30b   :  { %1373 = vmatpush3.bf16.xpose.msra.mxu1 %v493_v15  ;;  %1374 = vmatprep.mubr.msk.bf16.mxu1 %vm1608_vm0, %v1607_v1 }
 0x30c   :  { %1384 = vmatprep.subr.bf16.mxu1 %v1607_v1 }
 0x310   :  { %1369 = vmatmul.mubr.msk.bf16.vlgmr.msra.gmra.mrb[12].mxu0 %vm219_vm2, %v436_v14 }
 0x311   :  { %1379 = vmatpush3.bf16.msra.mxu0 %v565_v18  ;;  %1380 = vmatprep.mubr.msk.bf16.mxu0 %vm1608_vm0, %v1607_v1 }
 0x312   :  { %1375 = vmatmul.mubr.msk.bf16.vlgmr.msra.gmra.mrb[12].mxu1 %vm219_vm2, %v486_v10  ;;  %1390 = vmatprep.subr.bf16.mxu0 %v1607_v1 }
 0x313   :  { %1385 = vmatpush3.bf16.msra.mxu1 %v613_v19  ;;  %1386 = vmatprep.mubr.msk.bf16.mxu1 %vm1608_vm0, %v1607_v1 }
 0x314   :  { %1396 = vmatprep.subr.bf16.mxu1 %v1607_v1 }
 0x3db   :  { %v1804_v20 = vpop.f32.mrb[8].mxu0 }
 0x3dc   :  { %v1358_v21 = vpop.f32.mrb[9].mxu0 }
 0x3dd   :  { %v383_v22 = vpop.f32.mrb[10].mxu0  ;;  %v1806_v24 = vpop.f32.mrb[8].mxu1 }
 0x3de   :  { %v1359_v25 = vpop.f32.mrb[11].mxu0  ;;  %v1364_v27 = vpop.f32.mrb[9].mxu1 }
 0x3df   :  { %v429_v28 = vpop.f32.mrb[10].mxu1 }
 0x3e0   :  { %v1365_v29 = vpop.f32.mrb[11].mxu1 }
 0x3e3   :  { %v479_v30 = vpop.f32.mrb[12].mxu0 }
 0x3e4   :  { %v1370_v31 = vpop.f32.mrb[13].mxu0  ;;  %v535_v32 = vsel %vm219_vm2, %v479_v30, -inf }
 0x3e5   :  { %v529_v33 = vpop.f32.mrb[12].mxu1  ;;  %536 = vmax.xlane.f32.xlu1 %v535_v32  ;;  %v482_v34 = vpop.f32.mrb[14].mxu0 }
 0x3e6   :  { %v1371_v37 = vpop.f32.mrb[15].mxu0  ;;  %v1376_v38 = vpop.f32.mrb[13].mxu1  ;;  %v538_v39 = vsel %vm219_vm2, %v529_v33, -inf }
 0x3e7   :  { %539 = vmax.xlane.f32.xlu0 %v538_v39  ;;  %v532_v40 = vpop.f32.mrb[14].mxu1 }
 0x3e8   :  { %v1377_v41 = vpop.f32.mrb[15].mxu1 }
 0x3f6   :  { %660 = vrot.lane.b32.xlu1 %v1732_v23, %s1613_s7 }
 0x3fa   :  { %658 = vrot.lane.b32.xlu1 %v1744_v35, %s1614_s8 }
 0x3fd   :  { %710 = vrot.lane.b32.xlu0 %v1734_v26, %s1613_s7 }
 0x3fe   :  { %830 = vrot.lane.b32.xlu1 %v1760_v46, %s1614_s8 }
 0x401   :  { %708 = vrot.lane.b32.xlu0 %v1746_v36, %s1614_s8 }
 0x405   :  { %782 = vrot.lane.b32.xlu0 %v1758_v45, %s1614_s8 }
 0x472   :  { %v537_v42 = vpop.xlane.xlu1 %536 }
 0x473   :  { %v541_v43 = vsub.f32 %v479_v30, %v537_v42 }
 0x474   :  { %v540_v44 = vpop.xlane.xlu0 %539 }
 0x475   :  { %v543_v47 = vmul.f32 1.442695, %v541_v43  ;;  %v542_v48 = vsub.f32 %v529_v33, %v540_v44 }
 0x476   :  { %v661_v51 = vpop.permute.xlu1 %660 }
 0x477   :  { %1474 = vpow2.f32 %v543_v47  ;;  %v545_v49 = vmul.f32 1.442695, %v542_v48  ;;  %v666_v56 = vsel %vm219_vm2, %v661_v51, 0 }
 0x478   :  { %v711_v50 = vpop.permute.xlu0 %710 }
 0x479   :  { %1476 = vpow2.f32 %v545_v49  ;;  %v716_v59 = vsel %vm219_vm2, %v711_v50, 0 }
 0x47a   :  { %v659_v58 = vpop.permute.xlu1 %658 }
 0x47c   :  { %v709_v55 = vpop.permute.xlu0 %708 }
 0x47e   :  { %v831_v61 = vpop.permute.xlu1 %830 }
 0x47f   :  { %v836_v63 = vsel %vm342_vm3, %v831_v61, 0 }
 0x480   :  { %v783_v60 = vpop.permute.xlu0 %782 }
 0x481   :  { %v1816_v52 = vpop.eup %1474  ;;  %v788_v62 = vsel %vm342_vm3, %v783_v60, 0 }
 0x482   :  { %v557_v53 = vpack.c.bf16 %v1816_v52, %v1816_v52 }
 0x483   :  { %v1820_v54 = vpop.eup %1476 }
 0x484   :  { %1381 = vmatmul.mubr.msk.bf16.vlgmr.msra.gmra.mrb[16].mxu0 %vm219_vm2, %v557_v53  ;;  %v558_v57 = vpack.c.bf16 %v1820_v54, %v1820_v54 }
 0x485   :  { %1391 = vmatpush3.bf16.xpose.msra.mxu0 %v666_v56  ;;  %1392 = vmatprep.mubr.msk.bf16.mxu0 %vm1608_vm0, %v1607_v1 }
 0x486   :  { %1387 = vmatmul.mubr.msk.bf16.vlgmr.msra.gmra.mrb[16].mxu1 %vm219_vm2, %v558_v57  ;;  %1402 = vmatprep.subr.bf16.mxu0 %v1607_v1 }
 0x487   :  { %1397 = vmatpush3.bf16.xpose.msra.mxu1 %v716_v59  ;;  %1398 = vmatprep.mubr.msk.bf16.mxu1 %vm1608_vm0, %v1607_v1 }
 0x488   :  { %1408 = vmatprep.subr.bf16.mxu1 %v1607_v1 }
 0x48c   :  { %1393 = vmatmul.mubr.msk.bf16.vlgmr.msra.gmra.mrb[20].mxu0 %vm219_vm2, %v659_v58 }
 0x48d   :  { %1403 = vmatpush3.bf16.msra.mxu0 %v788_v62  ;;  %1404 = vmatprep.mubr.msk.bf16.mxu0 %vm1608_vm0, %v1607_v1 }
 0x48e   :  { %1399 = vmatmul.mubr.msk.bf16.vlgmr.msra.gmra.mrb[20].mxu1 %vm219_vm2, %v709_v55  ;;  %1414 = vmatprep.subr.bf16.mxu0 %v1607_v1 }
 0x48f   :  { %1409 = vmatpush3.bf16.msra.mxu1 %v836_v63  ;;  %1410 = vmatprep.mubr.msk.bf16.mxu1 %vm1608_vm0, %v1607_v1 }
 0x490   :  { %1420 = vmatprep.subr.bf16.mxu1 %v1607_v1 }
 0x557   :  { %v1844_v0 = vpop.f32.mrb[16].mxu0 }
 0x558   :  { %v1382_v3 = vpop.f32.mrb[17].mxu0 }
 0x559   :  { %v604_v4 = vpop.f32.mrb[18].mxu0  ;;  %v1846_v8 = vpop.f32.mrb[16].mxu1 }
 0x55a   :  { %v1383_v10 = vpop.f32.mrb[19].mxu0  ;;  %v1388_v12 = vpop.f32.mrb[17].mxu1  ;;  %v547_v4 = vsel %vm219_vm2, %v1816_v52, 0.0 }
 0x55b   :  { %v652_v13 = vpop.f32.mrb[18].mxu1  ;;  %v550_v10 = vsel %vm219_vm2, %v1820_v54, 0.0 }
 0x55c   :  { %v1389_v14 = vpop.f32.mrb[19].mxu1 }
 0x55f   :  { %v702_v15 = vpop.f32.mrb[20].mxu0 }
 0x560   :  { %v1394_v16 = vpop.f32.mrb[21].mxu0  ;;  %v758_v17 = vsel %vm219_vm2, %v702_v15, -inf }
 0x561   :  { %v752_v18 = vpop.f32.mrb[20].mxu1  ;;  %759 = vmax.xlane.f32.xlu1 %v758_v17  ;;  %v705_v19 = vpop.f32.mrb[22].mxu0 }
 0x562   :  { %v1395_v21 = vpop.f32.mrb[23].mxu0  ;;  %v1400_v22 = vpop.f32.mrb[21].mxu1  ;;  %v761_v25 = vsel %vm219_vm2, %v752_v18, -inf }
 0x563   :  { %762 = vmax.xlane.f32.xlu0 %v761_v25  ;;  %v755_v27 = vpop.f32.mrb[22].mxu1 }
 0x564   :  { %v1401_v28 = vpop.f32.mrb[23].mxu1 }
 0x572   :  { %883 = vrot.lane.b32.xlu1 %v1732_v23, %s1615_s9 }
 0x576   :  { %881 = vrot.lane.b32.xlu1 %v1744_v35, %s1616_s10 }
 0x579   :  { %933 = vrot.lane.b32.xlu0 %v1734_v26, %s1615_s9 }
 0x57d   :  { %931 = vrot.lane.b32.xlu0 %v1746_v36, %s1616_s10 }
 0x5ee   :  { %v760_v29 = vpop.xlane.xlu1 %759 }
 0x5ef   :  { %v764_v30 = vsub.f32 %v702_v15, %v760_v29 }
 0x5f0   :  { %v763_v31 = vpop.xlane.xlu0 %762 }
 0x5f1   :  { %v766_v32 = vmul.f32 1.442695, %v764_v30  ;;  %v765_v33 = vsub.f32 %v752_v18, %v763_v31  ;;  %v327_v30 = vsel %vm219_vm2, %v1776_v5, 0.0  ;;  %v330_v31 = vsel %vm219_vm2, %v1780_v9, 0.0 }
 0x5f2   :  { %v884_v38 = vpop.permute.xlu1 %883 }
 0x5f3   :  { %1478 = vpow2.f32 %v766_v32  ;;  %v768_v34 = vmul.f32 1.442695, %v765_v33  ;;  %v889_v35 = vsel %vm219_vm2, %v884_v38, 0  ;;  %v1468_v32 = vld [vmem:[#allocation7] sm:$0xff]  }
 0x5f4   :  { %v934_v40 = vpop.permute.xlu0 %933 }
 0x5f5   :  { %1480 = vpow2.f32 %v768_v34  ;;  %v939_v36 = vsel %vm219_vm2, %v934_v40, 0 }
 0x5f6   :  { %v882_v41 = vpop.permute.xlu1 %881 }
 0x5f8   :  { %v932_v42 = vpop.permute.xlu0 %931 }
 0x5fd   :  { %v1479_v37 = vpop.eup %1478 }
 0x5fe   :  { %v780_v23 = vpack.c.bf16 %v1479_v37, %v1479_v37  ;;  %v770_v13 = vsel %vm219_vm2, %v1479_v37, 0.0 }
 0x5ff   :  { %v1481_v39 = vpop.eup %1480 }
 0x600   :  { %1405 = vmatmul.mubr.msk.bf16.vlgmr.msra.gmra.mrb[24].mxu0 %vm219_vm2, %v780_v23  ;;  %v781_v26 = vpack.c.bf16 %v1481_v39, %v1481_v39  ;;  %v773_v12 = vsel %vm219_vm2, %v1481_v39, 0.0 }
 0x601   :  { %1415 = vmatpush3.bf16.xpose.msra.mxu0 %v889_v35  ;;  %1416 = vmatprep.mubr.msk.bf16.mxu0 %vm1608_vm0, %v1607_v1 }
 0x602   :  { %1411 = vmatmul.mubr.msk.bf16.vlgmr.msra.gmra.mrb[24].mxu1 %vm219_vm2, %v781_v26  ;;  %1426 = vmatprep.subr.bf16.mxu0 %v1607_v1 }
 0x603   :  { %1421 = vmatpush3.bf16.xpose.msra.mxu1 %v939_v36  ;;  %1422 = vmatprep.mubr.msk.bf16.mxu1 %vm1608_vm0, %v1607_v1 }
 0x604   :  { %1432 = vmatprep.subr.bf16.mxu1 %v1607_v1 }
 0x608   :  { %1417 = vmatmul.mubr.msk.bf16.vlgmr.msra.gmra.mrb[28].mxu0 %vm219_vm2, %v882_v41 }
 0x609   :  { %1428 = vmatprep.mubr.msk.bf16.mxu0 %vm1608_vm0, %v1607_v1 }
 0x60a   :  { %1423 = vmatmul.mubr.msk.bf16.vlgmr.msra.gmra.mrb[28].mxu1 %vm219_vm2, %v932_v42 }
 0x60b   :  { %1434 = vmatprep.mubr.msk.bf16.mxu1 %vm1608_vm0, %v1607_v1 }
 0x6d3   :  { %v1872_v43 = vpop.f32.mrb[24].mxu0 }
 0x6d4   :  { %v1406_v44 = vpop.f32.mrb[25].mxu0 }
 0x6d5   :  { %v827_v47 = vpop.f32.mrb[26].mxu0  ;;  %v1874_v48 = vpop.f32.mrb[24].mxu1  ;;  %v1469_v44 = vld [vmem:[#allocation7 + $0x8] sm:$0xff]  }
 0x6d6   :  { %v1407_v49 = vpop.f32.mrb[27].mxu0  ;;  %v1412_v50 = vpop.f32.mrb[25].mxu1 }
 0x6d7   :  { %v875_v51 = vpop.f32.mrb[26].mxu1 }
 0x6d8   :  { %v1413_v53 = vpop.f32.mrb[27].mxu1 }
 0x6db   :  { %v925_v55 = vpop.f32.mrb[28].mxu0 }
 0x6dc   :  { %v1418_v56 = vpop.f32.mrb[29].mxu0  ;;  %v981_v57 = vsel %vm219_vm2, %v925_v55, -inf }
 0x6dd   :  { %v975_v58 = vpop.f32.mrb[28].mxu1  ;;  %982 = vmax.xlane.f32.xlu1 %v981_v57  ;;  %v928_v59 = vpop.f32.mrb[30].mxu0 }
 0x6de   :  { %v1419_v60 = vpop.f32.mrb[31].mxu0  ;;  %v1424_v61 = vpop.f32.mrb[29].mxu1  ;;  %v984_v62 = vsel %vm219_vm2, %v975_v58, -inf }
 0x6df   :  { %985 = vmax.xlane.f32.xlu0 %v984_v62  ;;  %v978_v63 = vpop.f32.mrb[30].mxu1 }
 0x6e0   :  { %v1425_v3 = vpop.f32.mrb[31].mxu1 }
 0x6ee   :  { %1053 = vrot.lane.b32.xlu1 %v1760_v46, %s1616_s10 }
 0x6f5   :  { %1005 = vrot.lane.b32.xlu0 %v1758_v45, %s1616_s10 }
 0x712   :  { %548 = vadd.xlane.f32.xlu1 %v547_v4 }
 0x714   :  { %551 = vadd.xlane.f32.xlu0 %v550_v10 }
 0x716   :  { %774 = vadd.xlane.f32.xlu1 %v773_v12 }
 0x718   :  { %771 = vadd.xlane.f32.xlu0 %v770_v13 }
 0x76a   :  { %v983_v14 = vpop.xlane.xlu1 %982 }
 0x76b   :  { %v987_v15 = vsub.f32 %v925_v55, %v983_v14 }
 0x76c   :  { %v986_v46 = vpop.xlane.xlu0 %985 }
 0x76d   :  { %v989_v16 = vmul.f32 1.442695, %v987_v15  ;;  %v988_v17 = vsub.f32 %v975_v58, %v986_v46 }
 0x76e   :  { %v1054_v45 = vpop.permute.xlu1 %1053 }
 0x76f   :  { %1482 = vpow2.f32 %v989_v16  ;;  %v991_v18 = vmul.f32 1.442695, %v988_v17  ;;  %v1059_v52 = vsel %vm342_vm3, %v1054_v45, 0  ;;  %v1128_v17 = vsub.s32 3, %v1702_v2 }
 0x770   :  { %v1006_v19 = vpop.permute.xlu0 %1005  ;;  %1433 = vmatpush3.bf16.msra.mxu1 %v1059_v52 }
 0x771   :  { %1484 = vpow2.f32 %v991_v18  ;;  %v1011_v54 = vsel %vm342_vm3, %v1006_v19, 0  ;;  %v1129_v45 = vrot.slane %v1714_v11, %v1128_v17 }
 0x772   :  { %1427 = vmatpush3.bf16.msra.mxu0 %v1011_v54 }
 0x773   :  { %1438 = vmatprep.subr.bf16.mxu0 %v1607_v1 }
 0x779   :  { %v1483_v21 = vpop.eup %1482 }
 0x77a   :  { %v993_v22 = vsel %vm219_vm2, %v1483_v21, 0.0  ;;  %v1003_v25 = vpack.c.bf16 %v1483_v21, %v1483_v21 }
 0x77b   :  { %v1485_v27 = vpop.eup %1484  ;;  %994 = vadd.xlane.f32.xlu0 %v993_v22 }
 0x77c   :  { %1429 = vmatmul.mubr.msk.bf16.vlgmr.msra.gmra.mrb[32].mxu0 %vm219_vm2, %v1003_v25  ;;  %v996_v28 = vsel %vm219_vm2, %v1485_v27, 0.0  ;;  %v1004_v29 = vpack.c.bf16 %v1485_v27, %v1485_v27 }
 0x77d   :  { %997 = vadd.xlane.f32.xlu1 %v996_v28  ;;  %1442 = vmatprep.mubr.msk.bf16.mxu0 %vm1608_vm0, %v1607_v1 }
 0x77e   :  { %1435 = vmatmul.mubr.msk.bf16.vlgmr.msra.gmra.mrb[32].mxu1 %vm219_vm2, %v1004_v29 }
 0x77f   :  { %328 = vadd.xlane.f32.xlu0 %v327_v30 }
 0x781   :  { %331 = vadd.xlane.f32.xlu1 %v330_v31 }
 0x795   :  { %1140 = vrot.lane.b32.xlu0 %v1468_v32, %s1609_s30 }
 0x79f   :  { %v549_v33 = vpop.xlane.xlu1 %548 }
 0x7a0   :  { %1486 = vrcp.f32 %v549_v33 }
 0x7a1   :  { %v552_v34 = vpop.xlane.xlu0 %551 }
 0x7a2   :  { %1488 = vrcp.f32 %v552_v34 }
 0x7a3   :  { %v775_v37 = vpop.xlane.xlu1 %774 }
 0x7a4   :  { %1490 = vrcp.f32 %v775_v37 }
 0x7a5   :  { %v772_v38 = vpop.xlane.xlu0 %771 }
 0x7a6   :  { %1492 = vrcp.f32 %v772_v38 }
 0x7aa   :  { %v1487_v23 = vpop.eup %1486 }
 0x7ab   :  { %v655_v5 = vmul.f32 %v1487_v23, %v1844_v0 }
 0x7ac   :  { %v1489_v39 = vpop.eup %1488 }
 0x7ad   :  { %v656_v40 = vmul.f32 %v1489_v39, %v1846_v8 }
 0x7ae   :  { %v1491_v35 = vpop.eup %1490 }
 0x7af   :  { %v657_v9 = vpack.c.bf16 %v656_v40, %v655_v5  ;;  %v879_v41 = vmul.f32 %v1491_v35, %v1874_v48 }
 0x7b0   :  { %v1493_v26 = vpop.eup %1492 }
 0x7b1   :  { %1105 = vrot.lane.b32.xlu1 %v657_v9, %s1603_s28  ;;  %v878_v36 = vmul.f32 %v1493_v26, %v1872_v43 }
 0x7b3   :  { %v880_v42 = vpack.c.bf16 %v879_v41, %v878_v36  ;;  %v1220_v36 = vsub.s32 4, %v1702_v2  ;;  %v1226_v41 = vsub.s32 5, %v1702_v2 }
 0x7b5   :  { %1108 = vrot.lane.b32.xlu0 %v880_v42, %s1617_s11  ;;  %1142 = vrot.lane.b32.xlu1 %v1469_v44, %s1609_s30  ;;  %v1221_v42 = vrot.slane %v1714_v11, %v1220_v36 }
 0x808   :  { %v995_v47 = vpop.xlane.xlu0 %994 }
 0x80a   :  { %v998_v49 = vpop.xlane.xlu1 %997 }
 0x80c   :  { %v329_v0 = vpop.xlane.xlu0 %328 }
 0x80d   :  { %1494 = vrcp.f32 %v329_v0 }
 0x80e   :  { %v332_v8 = vpop.xlane.xlu1 %331 }
 0x80f   :  { %1496 = vrcp.f32 %v332_v8 }
 0x810   :  { %v1141_v50 = vpop.permute.xlu0 %1140  ;;  %1498 = vrcp.f32 %v995_v47 }
 0x811   :  { %1439 = vmatpush3.bf16.msra.mxu0 %v1141_v50  ;;  %1500 = vrcp.f32 %v998_v49  ;;  %v1227_v49 = vrot.slane %v1714_v11, %v1226_v41 }
 0x812   :  { %1440 = vmatprep.subr.bf16.mxu0 %v1607_v1 }
 0x817   :  { %v1495_v51 = vpop.eup %1494 }
 0x818   :  { %v432_v43 = vmul.f32 %v1495_v51, %v1804_v20 }
 0x819   :  { %v1497_v48 = vpop.eup %1496 }
 0x81a   :  { %v433_v53 = vmul.f32 %v1497_v48, %v1806_v24  ;;  %v1499_v60 = vpop.eup %1498 }
 0x81b   :  { %v1501_v62 = vpop.eup %1500 }
 0x81c   :  { %v434_v55 = vpack.c.bf16 %v433_v53, %v432_v43 }
 0x823   :  { %v1106_v56 = vpop.permute.xlu1 %1105 }
 0x824   :  { %v1115_v57 = vsel %vm219_vm2, %v434_v55, %v1106_v56 }
 0x827   :  { %v1143_v58 = vpop.permute.xlu1 %1142  ;;  %v1109_v14 = vpop.permute.xlu0 %1108 }
 0x828   :  { %1441 = vmatpush3.bf16.msra.mxu0 %v1143_v58  ;;  %v1118_v15 = vsel %vm1116_vm4, %v1115_v57, %v1109_v14 }
 0x84f   :  { %v1047_v59 = vpop.f32.mrb[32].mxu0 }
 0x850   :  { %v1430_v61 = vpop.f32.mrb[33].mxu0  ;;  %v1101_v3 = vmul.f32 %v1499_v60, %v1047_v59 }
 0x851   :  { %v1050_v63 = vpop.f32.mrb[34].mxu0  ;;  %v1095_v1 = vpop.f32.mrb[32].mxu1 }
 0x852   :  { %v1102_v4 = vmul.f32 %v1501_v62, %v1095_v1  ;;  %v1436_v20 = vpop.f32.mrb[33].mxu1  ;;  %v1431_v10 = vpop.f32.mrb[35].mxu0 }
 0x853   :  { %v1098_v12 = vpop.f32.mrb[34].mxu1 }
 0x854   :  { %v1103_v24 = vpack.c.bf16 %v1102_v4, %v1101_v3  ;;  %v1437_v13 = vpop.f32.mrb[35].mxu1 }
 0x856   :  { %1111 = vrot.lane.b32.xlu1 %v1103_v24, %s1618_s12 }
 0x8c8   :  { %v1112_v46 = vpop.permute.xlu1 %1111 }
 0x8c9   :  { %v1121_v16 = vsel %vm1119_vm5, %v1118_v15, %v1112_v46 }
 0x8ca   :  { %1443 = vmatmul.mubr.msk.bf16.vlgmr.msra.gmra.mrb[36].mxu0 %vm85_vm1, %v1121_v16 }
 0x99d   :  { %v1182_v18 = vpop.f32.mrb[36].mxu0 }
 0x99e   :  { %v1183_v52 = vadd.f32 %v1182_v18, %v1129_v45  ;;  %v1444_v19 = vpop.f32.mrb[37].mxu0 }
 0x99f   :  { %v1185_v54 = vpop.f32.mrb[38].mxu0 }
 0x9a0   :  { %v1186_v21 = vadd.f32 %v1185_v54, %v1129_v45  ;;  %v1445_v22 = vpop.f32.mrb[39].mxu0  ;;  %v1189_v25 = vadd.f32 %v1183_v52, %v1705_v6 }
 0x9a2   :  { %v1191_v27 = vsel %vm85_vm1, %v1189_v25, 0.0  ;;  %v1190_v28 = vadd.f32 %v1186_v21, %v1707_v7 }
 0x9a3   :  { %1192 = vadd.xlane.f32.xlu0 %v1191_v27 }
 0x9a4   :  { %v1194_v29 = vsel %vm85_vm1, %v1190_v28, 0.0 }
 0x9a5   :  { %1195 = vadd.xlane.f32.xlu1 %v1194_v29 }
 0xa30   :  { %v1193_v30 = vpop.xlane.xlu0 %1192 }
 0xa31   :  { %v1198_v31 = vmul.f32 0.03125, %v1193_v30 }
 0xa32   :  { %v1196_v32 = vpop.xlane.xlu1 %1195 }
 0xa33   :  { %v1200_v33 = vsub.f32 %v1189_v25, %v1198_v31  ;;  %v1199_v34 = vmul.f32 0.03125, %v1196_v32 }
 0xa35   :  { %v1201_v37 = vsub.f32 %v1190_v28, %v1199_v34  ;;  %v1202_v38 = vmul.f32 %v1200_v33, %v1200_v33 }
 0xa37   :  { %v1204_v23 = vsel %vm85_vm1, %v1202_v38, 0.0  ;;  %v1203_v39 = vmul.f32 %v1201_v37, %v1201_v37 }
 0xa38   :  { %1205 = vadd.xlane.f32.xlu0 %v1204_v23 }
 0xa39   :  { %v1207_v6 = vsel %vm85_vm1, %v1203_v39, 0.0 }
 0xa3c   :  { %1208 = vadd.xlane.f32.xlu0 %v1207_v6 }
 0xac5   :  { %v1206_v5 = vpop.xlane.xlu0 %1205 }
 0xac6   :  { %v1210_v7 = vmul.f32 0.03125, %v1206_v5 }
 0xac8   :  { %v1212_v40 = vadd.f32 1e-05, %v1210_v7 }
 0xac9   :  { %v1209_v35 = vpop.xlane.xlu0 %1208 }
 0xaca   :  { %1502 = vrsqrt.f32 %v1212_v40  ;;  %v1211_v9 = vmul.f32 0.03125, %v1209_v35 }
 0xacc   :  { %v1213_v26 = vadd.f32 1e-05, %v1211_v9 }
 0xace   :  { %1504 = vrsqrt.f32 %v1213_v26 }
 0xad4   :  { %v1503_v44 = vpop.eup %1502 }
 0xad5   :  { %v1216_v47 = vmul.f32 %v1503_v44, %v1200_v33 }
 0xad7   :  { %v1222_v0 = vmul.f32 %v1221_v42, %v1216_v47 }
 0xad8   :  { %v1505_v8 = vpop.eup %1504 }
 0xad9   :  { %v1217_v50 = vmul.f32 %v1505_v8, %v1201_v37  ;;  %v1228_v51 = vadd.f32 %v1227_v49, %v1222_v0 }
 0xadb   :  { %v1223_v43 = vmul.f32 %v1221_v42, %v1217_v50  ;;  %1230 = vst.msk [vmem:[#allocation8] sm:$0xff] %vm85_vm1, %v1228_v51 }
 0xadd   :  { %v1229_v48 = vadd.f32 %v1227_v49, %v1223_v43 }
 0xadf   :  { %1231 = vst.msk [vmem:[#allocation8 + $0x8] sm:$0xff] %vm85_vm1, %v1229_v48 }
 0xae0   :  { %1583 = shalt.err (!%p1580_p0)
}
 0xae1   :  { %s1584_s17 = scalar_lea.hbm %s1946_s4, 256 }
 0xae2   :  { %p1585_p1 = scmp.ne.s32.totalorder %s1946_s4, %s1584_s17  ;;  %p1588_p2 = scmp.lt.u32.totalorder %s1584_s17, %s1946_s4 }
 0xae4   :  { %p1590_p3 = pnand %p1588_p2, %p1585_p1 }
 0xae6   :  { %1593 = shalt.err (!%p1590_p3)
}
 0xae7   :  { %1243 = dma.vmem_to_hbm [thread:$0]  %s1238_s13, 256, %s1946_s4, [#allocation4], %s1602_s27, %s1602_s27, %s1603_s28  }
 0xae8   :  { %1598 = dma.done.wait [#allocation4], 256  }
 0xae9   :  { %1599 = vsyncadd [#allocation4], 4294967040 }
 0xaea   :  { %1247 = vsyncpa [#allocation3], 1 }
 0xaeb   :  { %1248 = vsyncpa [#allocation6], 1 }
 0xaec   :  { %1249 = vsyncpa [#allocation4], 1 }

</bundles_post_ra>
